<compile_context>
chip_gen: v7x
topology: tpu7x:2x2x1
jax: 0.10.0
libtpu: 0.0.40
codegen_flags: <defaults>
</compile_context>

<pallas_src>
import functools

import jax
import jax.numpy as jnp
from jax.experimental import pallas as pl
from jax.experimental.pallas import tpu as pltpu

SUBLANE = 8  # sublane count of a vreg (second-to-last dim granularity)


def _round_up(n, m):
    return ((n + m - 1) // m) * m


# --------------------------------------------------------------------------- #
# Kernel: full 3-layer MLP on one batch tile (all weights resident in VMEM).
# --------------------------------------------------------------------------- #
def mlp_kernel(x_ref, w1_ref, b1_ref, w2_ref, b2_ref, w3_ref, b3_ref, o_ref):
    x = x_ref[...]
    h1 = jnp.tanh(
        jnp.dot(x, w1_ref[...], preferred_element_type=jnp.float32) + b1_ref[...]
    )
    h2 = jnp.tanh(
        jnp.dot(h1, w2_ref[...], preferred_element_type=jnp.float32) + b2_ref[...]
    )
    o_ref[...] = jnp.tanh(
        jnp.dot(h2, w3_ref[...], preferred_element_type=jnp.float32) + b3_ref[...]
    ).astype(o_ref.dtype)


# --------------------------------------------------------------------------- #
# Parameter handling
# --------------------------------------------------------------------------- #
def init_params(key, state_dim, num_actions, fc1_dims=64, fc2_dims=32):
    """PyTorch-style Linear init: U(-1/sqrt(fan_in), 1/sqrt(fan_in)).

    Weights are stored (in_features, out_features) so the kernel computes
    x @ W + b (== PyTorch's x @ W.T with W=(out,in)).  Biases are (1, out).
    """

    def linear(key, fan_in, fan_out):
        kw, kb = jax.random.split(key)
        bound = 1.0 / jnp.sqrt(fan_in)
        w = jax.random.uniform(kw, (fan_in, fan_out), jnp.float32, -bound, bound)
        b = jax.random.uniform(kb, (1, fan_out), jnp.float32, -bound, bound)
        return w, b

    k1, k2, k3 = jax.random.split(key, 3)
    w1, b1 = linear(k1, state_dim, fc1_dims)
    w2, b2 = linear(k2, fc1_dims, fc2_dims)
    w3, b3 = linear(k3, fc2_dims, num_actions)
    return (w1, b1, w2, b2, w3, b3)


# --------------------------------------------------------------------------- #
# Forward pass
# --------------------------------------------------------------------------- #
@functools.partial(jax.jit, static_argnames=("tile_b",))
def network_forward(x, params, *, tile_b=4096):
    """x: (B, state_dim) f32 -> (B, num_actions) f32."""
    w1, b1, w2, b2, w3, b3 = params
    B, S = x.shape
    H1 = w1.shape[1]
    H2 = w2.shape[1]
    A = w3.shape[1]

    # Batch tile: multiple of 8 sublanes, large to amortize per-step overhead.
    B_pad8 = _round_up(B, SUBLANE)
    tb = _round_up(min(tile_b, B_pad8), SUBLANE)
    # v7x has 2 TensorCores: when the whole (reasonably large) batch would fit
    # in one grid step, split it into two so the "parallel" axis shards.
    if B_pad8 <= tb and B_pad8 >= 8 * SUBLANE:
        tb = _round_up((B_pad8 + 1) // 2, SUBLANE)
    Bp = _round_up(B, tb)
    grid = (Bp // tb,)

    # Pad only batch rows (zero rows -> tanh(bias) rows, sliced off below).
    x_p = jnp.pad(x, ((0, Bp - B), (0, 0)))

    cost = pl.CostEstimate(
        flops=2 * Bp * (S * H1 + H1 * H2 + H2 * A),
        transcendentals=Bp * (H1 + H2 + A),
        bytes_accessed=4
        * (Bp * S + S * H1 + H1 + H1 * H2 + H2 + H2 * A + A + Bp * A),
    )

    const = lambda i: (0, 0)  # weights/biases resident across all grid steps
    out_p = pl.pallas_call(
        mlp_kernel,
        out_shape=jax.ShapeDtypeStruct((Bp, A), jnp.float32),
        grid=grid,
        in_specs=[
            pl.BlockSpec((tb, S), lambda i: (i, 0)),  # x: streamed per tile
            pl.BlockSpec((S, H1), const),
            pl.BlockSpec((1, H1), const),
            pl.BlockSpec((H1, H2), const),
            pl.BlockSpec((1, H2), const),
            pl.BlockSpec((H2, A), const),
            pl.BlockSpec((1, A), const),
        ],
        out_specs=pl.BlockSpec((tb, A), lambda i: (i, 0)),
        compiler_params=pltpu.CompilerParams(
            dimension_semantics=("parallel",),
        ),
        cost_estimate=cost,
    )(x_p, w1, b1, w2, b2, w3, b3)

    return out_p[:B]


# --------------------------------------------------------------------------- #
# Demo / correctness check
# --------------------------------------------------------------------------- #
if __name__ == "__main__":
    key = jax.random.PRNGKey(0)
    k_params, k_x1, k_x2 = jax.random.split(key, 3)

    state_dim = 8
    num_actions = 4
    params = init_params(k_params, state_dim, num_actions)
    w1, b1, w2, b2, w3, b3 = params

    def ref_fn(x):
        return jnp.tanh(jnp.tanh(jnp.tanh(x @ w1 + b1) @ w2 + b2) @ w3 + b3)

    # Small-batch check (single grid step).
    batch = 8
    x = jax.random.normal(k_x1, (batch, state_dim), dtype=jnp.float32)
    out = jax.block_until_ready(network_forward(x, params))
    assert out.shape == (batch, num_actions)
    assert jnp.allclose(out, ref_fn(x), atol=1e-5), "mismatch vs reference (B=8)"

    # Larger-batch check (multi-step grid / two-TC split path, padded rows).
    batch2 = 100
    x2 = jax.random.normal(k_x2, (batch2, state_dim), dtype=jnp.float32)
    out2 = jax.block_until_ready(network_forward(x2, params))
    assert out2.shape == (batch2, num_actions)
    assert jnp.allclose(out2, ref_fn(x2), atol=1e-5), "mismatch vs reference (B=100)"

    print("KERNEL_OK")
</pallas_src>

<mosaic_0001>
module attributes {stable_mosaic.version = 11 : i64} {
  func.func @mlp_kernel(%arg0: i32, %arg1: memref<8x8xf32, #tpu.memory_space<vmem>>, %arg2: memref<8x64xf32, #tpu.memory_space<vmem>>, %arg3: memref<1x64xf32, #tpu.memory_space<vmem>>, %arg4: memref<64x32xf32, #tpu.memory_space<vmem>>, %arg5: memref<1x32xf32, #tpu.memory_space<vmem>>, %arg6: memref<32x4xf32, #tpu.memory_space<vmem>>, %arg7: memref<1x4xf32, #tpu.memory_space<vmem>>, %arg8: memref<8x4xf32, #tpu.memory_space<vmem>>) attributes {dimension_semantics = [#tpu.dimension_semantics<parallel>], iteration_bounds = array<i64: 1>, scalar_prefetch = 0 : i64, scratch_operands = 0 : i64, tpu.core_type = #tpu.core_type<tc>, window_params = [{transform_indices = @transform_0, window_bounds = array<i64: 8, 8>}, {pipeline_mode = #tpu.pipeline_mode<synchronous>, transform_indices = @transform_1, window_bounds = array<i64: 8, 64>}, {pipeline_mode = #tpu.pipeline_mode<synchronous>, transform_indices = @transform_2, window_bounds = array<i64: 1, 64>}, {pipeline_mode = #tpu.pipeline_mode<synchronous>, transform_indices = @transform_3, window_bounds = array<i64: 64, 32>}, {pipeline_mode = #tpu.pipeline_mode<synchronous>, transform_indices = @transform_4, window_bounds = array<i64: 1, 32>}, {pipeline_mode = #tpu.pipeline_mode<synchronous>, transform_indices = @transform_5, window_bounds = array<i64: 32, 4>}, {pipeline_mode = #tpu.pipeline_mode<synchronous>, transform_indices = @transform_6, window_bounds = array<i64: 1, 4>}, {transform_indices = @transform_7, window_bounds = array<i64: 8, 4>}]} {
    %c0 = arith.constant 0 : index
    %c0_0 = arith.constant 0 : index
    %0 = vector.load %arg1[%c0, %c0_0] : memref<8x8xf32, #tpu.memory_space<vmem>>, vector<8x8xf32>
    %c0_1 = arith.constant 0 : index
    %c0_2 = arith.constant 0 : index
    %1 = vector.load %arg2[%c0_1, %c0_2] : memref<8x64xf32, #tpu.memory_space<vmem>>, vector<8x64xf32>
    %cst = arith.constant dense<0.000000e+00> : vector<8x64xf32>
    %2 = tpu.matmul %0, %1, %cst {dimension_numbers = #tpu.dot_dimension_numbers<[1], [0], [0], [1], [0, 0, 1, 1], [], []>} : vector<8x8xf32>, vector<8x64xf32>, vector<8x64xf32> -> vector<8x64xf32>
    %c0_3 = arith.constant 0 : index
    %c0_4 = arith.constant 0 : index
    %3 = vector.load %arg3[%c0_3, %c0_4] : memref<1x64xf32, #tpu.memory_space<vmem>>, vector<1x64xf32>
    %4 = vector.broadcast %3 : vector<1x64xf32> to vector<8x64xf32>
    %5 = arith.addf %2, %4 : vector<8x64xf32>
    %6 = math.tanh %5 : vector<8x64xf32>
    %c0_5 = arith.constant 0 : index
    %c0_6 = arith.constant 0 : index
    %7 = vector.load %arg4[%c0_5, %c0_6] : memref<64x32xf32, #tpu.memory_space<vmem>>, vector<64x32xf32>
    %cst_7 = arith.constant dense<0.000000e+00> : vector<8x32xf32>
    %8 = tpu.matmul %6, %7, %cst_7 {dimension_numbers = #tpu.dot_dimension_numbers<[1], [0], [0], [1], [0, 0, 1, 1], [], []>} : vector<8x64xf32>, vector<64x32xf32>, vector<8x32xf32> -> vector<8x32xf32>
    %c0_8 = arith.constant 0 : index
    %c0_9 = arith.constant 0 : index
    %9 = vector.load %arg5[%c0_8, %c0_9] : memref<1x32xf32, #tpu.memory_space<vmem>>, vector<1x32xf32>
    %10 = vector.broadcast %9 : vector<1x32xf32> to vector<8x32xf32>
    %11 = arith.addf %8, %10 : vector<8x32xf32>
    %12 = math.tanh %11 : vector<8x32xf32>
    %c0_10 = arith.constant 0 : index
    %c0_11 = arith.constant 0 : index
    %13 = vector.load %arg6[%c0_10, %c0_11] : memref<32x4xf32, #tpu.memory_space<vmem>>, vector<32x4xf32>
    %cst_12 = arith.constant dense<0.000000e+00> : vector<8x4xf32>
    %14 = tpu.matmul %12, %13, %cst_12 {dimension_numbers = #tpu.dot_dimension_numbers<[1], [0], [0], [1], [0, 0, 1, 1], [], []>} : vector<8x32xf32>, vector<32x4xf32>, vector<8x4xf32> -> vector<8x4xf32>
    %c0_13 = arith.constant 0 : index
    %c0_14 = arith.constant 0 : index
    %15 = vector.load %arg7[%c0_13, %c0_14] : memref<1x4xf32, #tpu.memory_space<vmem>>, vector<1x4xf32>
    %16 = vector.broadcast %15 : vector<1x4xf32> to vector<8x4xf32>
    %17 = arith.addf %14, %16 : vector<8x4xf32>
    %18 = math.tanh %17 : vector<8x4xf32>
    %c0_15 = arith.constant 0 : index
    %c0_16 = arith.constant 0 : index
    %19 = vector.load %arg8[%c0_15, %c0_16] : memref<8x4xf32, #tpu.memory_space<vmem>>, vector<8x4xf32>
    tpu.vector_store %arg8[%c0_15, %c0_16], %18 {strides = array<i32>} : memref<8x4xf32, #tpu.memory_space<vmem>>, vector<8x4xf32>,
    return
  }
  func.func @transform_0(%arg0: i32) -> (i32, i32) {
    %c0_i32 = arith.constant 0 : i32
    %c0_i32_0 = arith.constant 0 : i32
    return %arg0, %c0_i32 : i32, i32
  }
  func.func @transform_1(%arg0: i32) -> (i32, i32) {
    %c0_i32 = arith.constant 0 : i32
    %c0_i32_0 = arith.constant 0 : i32
    %c0_i32_1 = arith.constant 0 : i32
    return %c0_i32, %c0_i32_0 : i32, i32
  }
  func.func @transform_2(%arg0: i32) -> (i32, i32) {
    %c0_i32 = arith.constant 0 : i32
    %c0_i32_0 = arith.constant 0 : i32
    %c0_i32_1 = arith.constant 0 : i32
    return %c0_i32, %c0_i32_0 : i32, i32
  }
  func.func @transform_3(%arg0: i32) -> (i32, i32) {
    %c0_i32 = arith.constant 0 : i32
    %c0_i32_0 = arith.constant 0 : i32
    %c0_i32_1 = arith.constant 0 : i32
    return %c0_i32, %c0_i32_0 : i32, i32
  }
  func.func @transform_4(%arg0: i32) -> (i32, i32) {
    %c0_i32 = arith.constant 0 : i32
    %c0_i32_0 = arith.constant 0 : i32
    %c0_i32_1 = arith.constant 0 : i32
    return %c0_i32, %c0_i32_0 : i32, i32
  }
  func.func @transform_5(%arg0: i32) -> (i32, i32) {
    %c0_i32 = arith.constant 0 : i32
    %c0_i32_0 = arith.constant 0 : i32
    %c0_i32_1 = arith.constant 0 : i32
    return %c0_i32, %c0_i32_0 : i32, i32
  }
  func.func @transform_6(%arg0: i32) -> (i32, i32) {
    %c0_i32 = arith.constant 0 : i32
    %c0_i32_0 = arith.constant 0 : i32
    %c0_i32_1 = arith.constant 0 : i32
    return %c0_i32, %c0_i32_0 : i32, i32
  }
  func.func @transform_7(%arg0: i32) -> (i32, i32) {
    %c0_i32 = arith.constant 0 : i32
    %c0_i32_0 = arith.constant 0 : i32
    return %arg0, %c0_i32 : i32, i32
  }
}

</mosaic_0001>

<bundles_post_ra>
// kernel: network_forward.1
= control target key start
LH: loop header
LB: loop body
LE: loop exit
PB: predicated region body
PF: predicated region fallthrough
CT: control target
= control target key end

     0   :  { %vm35_vm0 = vcmask 64512   ;;  %v376_v0 = vmov 0.0   ;;  %vm377_vm1 = vmmov 0   ;;  %v378_v4 = vmov 0.0|0.0   ;;  %s473_s1 = inlined_call_operand.vmem [shape: f32[8,64], index: 1, kind: input, shape index: {}]   ;;  %s474_s0 = inlined_call_operand.vmem [shape: f32[8,8], index: 0, kind: input, shape index: {}]   ;;  %s475_s3 = inlined_call_operand.vmem [shape: f32[64,32], index: 3, kind: input, shape index: {}]   ;;  %s476_s2 = inlined_call_operand.vmem [shape: f32[1,64], index: 2, kind: input, shape index: {}]   ;;  %s477_s5 = inlined_call_operand.vmem [shape: f32[32,4], index: 5, kind: input, shape index: {}]   ;;  %s478_s4 = inlined_call_operand.vmem [shape: f32[1,32], index: 4, kind: input, shape index: {}]   ;;  %s479_s6 = inlined_call_operand.vmem [shape: f32[1,4], index: 6, kind: input, shape index: {}]   ;;  %s480_s7 = inlined_call_operand.vmem [shape: f32[8,4], index: 7, kind: output, shape index: {}]  }
   0x1   :  { %314 = vmatprep.subr.mxu0 %v376_v0  ;;  %v27_v1 = vld [vmem:[%s473_s1] sm:$0xff]  ;;  %316 = vmatprep.mubr.msk.f32.mxu0 %vm377_vm1, %v376_v0  ;;  %v111_v5 = vld [vmem:[%s475_s3 + $0x8] sm:$0xff]  ;;  %v112_v7 = vld [vmem:[%s475_s3 + $0x10] sm:$0xff]  ;;  %vm125_vm2 = vcmask 523264   ;;  %vm211_vm3 = vcmask 261120   ;;  %vm286_vm4 = vcmask 31744  }
   0x2   :  { %v26_v2 = vld [vmem:[%s474_s0] sm:$0xff]  ;;  %315 = vmatpush3.msra.mxu0 %v27_v1  ;;  %349 = vmatprep.subr.bf16.mxu1 %v378_v4  ;;  %v113_v8 = vld [vmem:[%s475_s3 + $0x18] sm:$0xff]  ;;  %v115_v11 = vld [vmem:[%s475_s3 + $0x28] sm:$0xff] }
   0x3   :  { %v110_v3 = vld [vmem:[%s475_s3] sm:$0xff]  ;;  %317 = vmatmul.mubr.msk.f32.vlgmr.msra.gmra.mrb[0].mxu0 %vm35_vm0, %v26_v2  ;;  %335 = vmatprep.mubr.msk.f32.mxu1 %vm377_vm1, %v376_v0  ;;  %v353_v9 = vpack.c.bf16 %v113_v8, %v112_v7  ;;  %v116_v13 = vld [vmem:[%s475_s3 + $0x30] sm:$0xff]  ;;  %v117_v14 = vld [vmem:[%s475_s3 + $0x38] sm:$0xff] }
   0x4   :  { %v350_v6 = vpack.c.bf16 %v111_v5, %v110_v3  ;;  %361 = vmatprep.subr.bf16.mxu0 %v378_v4  ;;  %346 = vmatprep.mubr.msk.f32.mxu0 %vm377_vm1, %v376_v0  ;;  %v114_v10 = vld [vmem:[%s475_s3 + $0x20] sm:$0xff]  ;;  %v359_v15 = vpack.c.bf16 %v117_v14, %v116_v13  ;;  %v201_v22 = vld [vmem:[%s477_s5 + $0x8] sm:$0xff]  ;;  %v202_v23 = vld [vmem:[%s477_s5 + $0x10] sm:$0xff] }
   0x5   :  { %v356_v12 = vpack.c.bf16 %v115_v11, %v114_v10  ;;  %v292_v16 = vld [vmem:[%s476_s2] ss:$0 sm:$0xff]  ;;  %v203_v25 = vld [vmem:[%s477_s5 + $0x18] sm:$0xff] }
   0x6   :  { %351 = vmatpush3.bf16.msra.mxu1 %v350_v6  ;;  %v200_v21 = vld [vmem:[%s477_s5] sm:$0xff]  ;;  %v365_v26 = vpack.c.bf16 %v203_v25, %v202_v23 }
   0x7   :  { %352 = vmatprep.subr.bf16.mxu1 %v378_v4  ;;  %v362_v24 = vpack.c.bf16 %v201_v22, %v200_v21  ;;  %v294_v27 = vld [vmem:[%s478_s4] ss:$0 sm:$0xff] }
   0x8   :  { %v296_v32 = vld [vmem:[%s479_s6] ss:$0 sm:$0xff] }
   0x9   :  { %363 = vmatpush3.bf16.msra.mxu0 %v362_v24 }
   0xa   :  { %354 = vmatpush3.bf16.msra.mxu1 %v353_v9  ;;  %364 = vmatprep.subr.bf16.mxu0 %v378_v4 }
   0xb   :  { %355 = vmatprep.subr.bf16.mxu1 %v378_v4 }
   0xd   :  { %366 = vmatpush3.bf16.msra.mxu0 %v365_v26 }
   0xe   :  { %357 = vmatpush3.bf16.msra.mxu1 %v356_v12 }
   0xf   :  { %358 = vmatprep.subr.bf16.mxu1 %v378_v4 }
  0x12   :  { %360 = vmatpush3.bf16.msra.mxu1 %v359_v15 }
  0xd6   :  { %v105_v17 = vpop.f32.mrb[0].mxu0 }
  0xd7   :  { %v106_v18 = vadd.f32 %v292_v16, %v105_v17  ;;  %v318_v19 = vpop.f32.mrb[1].mxu0 }
  0xd9   :  { %370 = vtanh.f32 %v106_v18 }
  0xe3   :  { %v371_v20 = vpop.eup %370 }
  0xe4   :  { %336 = vmatmul.mubr.msk.f32.vlgmr.msra.gmra.mrb[0].mxu1 %vm125_vm2, %v371_v20 }
 0x1b7   :  { %v195_v28 = vpop.f32.mrb[0].mxu1 }
 0x1b8   :  { %v196_v29 = vadd.f32 %v294_v27, %v195_v28  ;;  %v337_v30 = vpop.f32.mrb[1].mxu1 }
 0x1ba   :  { %372 = vtanh.f32 %v196_v29 }
 0x1c4   :  { %v373_v31 = vpop.eup %372 }
 0x1c5   :  { %347 = vmatmul.mubr.msk.f32.vlgmr.msra.gmra.mrb[2].mxu0 %vm211_vm3, %v373_v31 }
 0x298   :  { %v281_v33 = vpop.f32.mrb[2].mxu0 }
 0x299   :  { %v282_v34 = vadd.f32 %v296_v32, %v281_v33  ;;  %v348_v35 = vpop.f32.mrb[3].mxu0 }
 0x29b   :  { %374 = vtanh.f32 %v282_v34 }
 0x2a5   :  { %v375_v36 = vpop.eup %374 }
 0x2a6   :  { %287 = vst.msk [vmem:[%s480_s7] sm:$0xff] %vm286_vm4, %v375_v36 }

</bundles_post_ra>
